<compile_context>
chip_gen: v5e
topology: v5e:2x2
jax: 0.10.0
libtpu: 0.0.40
codegen_flags: <defaults>
</compile_context>

<pallas_src>
import math

import jax
import jax.numpy as jnp
from jax.experimental import pallas as pl
from jax.experimental.pallas import tpu as pltpu


# ----------------------------- Pallas kernel ------------------------------ #
def _o_proj_rotate_kernel(x_ref, w_ref, o_ref):
    # x_ref : (tm, D)   activation tile
    # w_ref : (D, tn)   folded-weight tile
    # o_ref : (tm, tn)  output tile
    o_ref[...] = jnp.dot(
        x_ref[...], w_ref[...], preferred_element_type=jnp.float32
    ).astype(o_ref.dtype)


# ------------------------------ helpers ------------------------------------ #
def _hadamard_matrix(n: int) -> jnp.ndarray:
    """Sylvester Hadamard matrix of size n (n must be a power of 2)."""
    assert n > 0 and (n & (n - 1)) == 0, "Hadamard size must be a power of 2"
    h = jnp.array([[1.0]], dtype=jnp.float32)
    while h.shape[0] < n:
        h = jnp.block([[h, h], [h, -h]])
    return h


def _round_up(x: int, m: int) -> int:
    return ((x + m - 1) // m) * m


def _vmem_budget_bytes() -> int:
    """~75% of physical per-core VMEM (96 MiB on v5e/v6e, 48 MiB on v7x)."""
    cap = 128 * 1024 * 1024
    try:
        info = pltpu.get_tpu_info()
        cap = int(getattr(info, "vmem_capacity_bytes", cap))
    except Exception:
        pass
    return min(int(cap * 3 // 4), 100 * 1024 * 1024)


def _pick_tn(n: int, tn: int) -> int:
    """Largest multiple of 128 that divides n and is <= tn (else n itself)."""
    if n % 128 != 0:
        return n                                    # small / odd hidden size
    t = min(tn, n)
    t -= t % 128
    while t >= 128:
        if n % t == 0:
            return t
        t -= 128
    return 128


def fold_o_proj_weight(w: jnp.ndarray, had_dim: int, compute_dtype) -> jnp.ndarray:
    """Fold the per-group Hadamard mix into the o_proj weight (block-structured).

    w: (N, D) Linear weight.  Returns W_eff: (D, N) in `compute_dtype`.
    Callers should cache this at weight-load time.
    """
    n_out, d = w.shape
    assert d % had_dim == 0
    g = d // had_dim
    h = _hadamard_matrix(g) / math.sqrt(g)                       # (G, G) f32
    wt3 = w.astype(jnp.float32).T.reshape(g, had_dim, n_out)     # (G, had, N)
    w_eff = jnp.einsum("hg,gdn->hdn", h, wt3).reshape(d, n_out)  # (D, N)
    return w_eff.astype(compute_dtype)


# ------------------------------ JAX wrapper ------------------------------- #
def act_o_proj_rotate(x: jnp.ndarray, w: jnp.ndarray, had_dim: int,
                      *, w_eff: jnp.ndarray = None,
                      tm: int = 1024, tn: int = 512,
                      compute_dtype=None) -> jnp.ndarray:
    """Pallas implementation of Act_o_proj_RotateWrapper.forward.

    x : (..., D) activations.   w : (N, D) o_proj weight (Linear, no bias).
    w_eff: optionally pass a precomputed/cached folded weight (D, N).
    """
    x_dtype = x.dtype
    init_shape = x.shape
    d = init_shape[-1]
    n = w.shape[0]
    assert d % had_dim == 0

    if compute_dtype is None:
        # bf16 MXU operands (f32 accumulation) by default; rotation is bf16-tolerant.
        compute_dtype = jnp.bfloat16 if x_dtype == jnp.float32 else x_dtype
    compute_dtype = jnp.dtype(compute_dtype)
    eb_c = compute_dtype.itemsize
    eb_o = jnp.dtype(x_dtype).itemsize

    # ---- folded weight (block-structured; cache w_eff upstream to skip) ----
    if w_eff is None:
        w_eff = fold_o_proj_weight(w, had_dim, compute_dtype)
    else:
        w_eff = w_eff.astype(compute_dtype)

    # ---- flatten tokens; pad M only to the dtype packing granularity ----
    x2 = x.reshape(-1, d).astype(compute_dtype)        # (M, D)
    m = x2.shape[0]
    sub = {4: 8, 2: 16, 1: 32}.get(eb_c, 8)            # sublane packing rows
    m_pad = _round_up(m, sub)
    if m_pad != m:
        x2 = jnp.pad(x2, ((0, m_pad - m), (0, 0)))

    # ---- tile selection under a generation-aware VMEM budget ----
    budget = _vmem_budget_bytes()
    tn_eff = _pick_tn(n, tn)
    tm_eff = min(_round_up(tm, sub), m_pad)

    def vmem_need(t_m, t_n):
        # double-buffered in/out blocks (counted once here, not twice)
        return 2 * (t_m * d + d * t_n) * eb_c + 2 * t_m * t_n * eb_o

    while tm_eff > sub and vmem_need(tm_eff, tn_eff) > budget:
        tm_eff = max(sub, _round_up(tm_eff // 2, sub) - (_round_up(tm_eff // 2, sub) % sub))
        tm_eff = max(sub, (tm_eff // sub) * sub)

    grid = (pl.cdiv(m_pad, tm_eff), n // tn_eff)       # M leading (megacore shards M)

    vmem_limit = int(min(budget, max(vmem_need(tm_eff, tn_eff) + (4 << 20), 32 << 20)))

    cost = pl.CostEstimate(
        flops=2 * m_pad * d * n,
        transcendentals=0,
        bytes_accessed=m_pad * d * eb_c + grid[0] * d * n * eb_c + m_pad * n * eb_o,
    )

    out = pl.pallas_call(
        _o_proj_rotate_kernel,
        out_shape=jax.ShapeDtypeStruct((m_pad, n), x_dtype),
        grid_spec=pltpu.PrefetchScalarGridSpec(
            num_scalar_prefetch=0,
            grid=grid,
            in_specs=[
                pl.BlockSpec((tm_eff, d), lambda i, j: (i, 0)),    # x tile
                pl.BlockSpec((d, tn_eff), lambda i, j: (0, j)),    # folded weight
            ],
            out_specs=pl.BlockSpec((tm_eff, tn_eff), lambda i, j: (i, j)),
        ),
        compiler_params=pltpu.CompilerParams(
            dimension_semantics=("parallel", "parallel"),
            vmem_limit_bytes=vmem_limit),
        cost_estimate=cost,
    )(x2, w_eff)

    if m_pad != m:
        out = out[:m]
    return out.reshape(init_shape[:-1] + (n,)).astype(x_dtype)


# --------------------------- pure-JAX reference ---------------------------- #
def _reference(x, w, had_dim):
    init_shape = x.shape
    d = init_shape[-1]
    g = d // had_dim
    h_mat = _hadamard_matrix(g)
    # reshape(-1, G, had) -> transpose(1,2) -> hadamard on last dim (groups) -> back
    x3 = x.reshape(-1, g, had_dim)
    x_had = jnp.einsum("hg,ngd->nhd", h_mat, x3) / math.sqrt(g)
    x_had = x_had.reshape(init_shape)
    return (x_had.reshape(-1, d) @ w.T).reshape(init_shape[:-1] + (w.shape[0],))


# --------------------------------- main ------------------------------------ #
if __name__ == "__main__":
    batch, seq, hidden = 2, 8, 128
    had_dim = 32                       # => G = 4 groups mixed by the Hadamard

    key = jax.random.PRNGKey(0)
    kx, kw = jax.random.split(key)
    x = jax.random.normal(kx, (batch, seq, hidden), dtype=jnp.float32)
    # o_proj weight, Linear(hidden, hidden, bias=False), deterministic init
    w = jax.random.normal(kw, (hidden, hidden), dtype=jnp.float32) * (1.0 / math.sqrt(hidden))

    ref = _reference(x, w, had_dim)

    # --- f32 activations, f32 MXU operands (tight check) ---
    out_f32 = jax.block_until_ready(
        act_o_proj_rotate(x, w, had_dim, compute_dtype=jnp.float32))
    assert out_f32.shape == x.shape and out_f32.dtype == x.dtype
    assert jnp.allclose(out_f32, ref, atol=1e-4, rtol=1e-4), "f32 mismatch vs reference"

    # --- f32 activations, default path (bf16 operands, f32 accumulation) ---
    out_def = jax.block_until_ready(act_o_proj_rotate(x, w, had_dim))
    assert out_def.shape == x.shape and out_def.dtype == x.dtype
    assert jnp.allclose(out_def, ref, atol=5e-2, rtol=5e-2), \
        "default (bf16-compute) mismatch vs reference"

    # --- bf16 activation path, with a precomputed (cached) folded weight ---
    x_bf = x.astype(jnp.bfloat16)
    w_eff_cached = fold_o_proj_weight(w, had_dim, jnp.bfloat16)
    out_bf = jax.block_until_ready(
        act_o_proj_rotate(x_bf, w, had_dim, w_eff=w_eff_cached))
    assert out_bf.shape == x.shape and out_bf.dtype == jnp.bfloat16
    assert jnp.allclose(out_bf.astype(jnp.float32), ref, atol=1e-1, rtol=1e-1), \
        "bf16 mismatch vs reference"

    print("KERNEL_OK")
</pallas_src>

<mosaic_0001>
module attributes {stable_mosaic.version = 11 : i64} {
  func.func @_o_proj_rotate_kernel(%arg0: i32, %arg1: i32, %arg2: memref<16x128xf32, #tpu.memory_space<vmem>>, %arg3: memref<128x128xf32, #tpu.memory_space<vmem>>, %arg4: memref<16x128xf32, #tpu.memory_space<vmem>>) attributes {dimension_semantics = [#tpu.dimension_semantics<parallel>, #tpu.dimension_semantics<parallel>], iteration_bounds = array<i64: 1, 1>, scalar_prefetch = 0 : i64, scratch_operands = 0 : i64, tpu.core_type = #tpu.core_type<tc>, window_params = [{transform_indices = @transform_0, window_bounds = array<i64: 16, 128>}, {transform_indices = @transform_1, window_bounds = array<i64: 128, 128>}, {transform_indices = @transform_2, window_bounds = array<i64: 16, 128>}]} {
    %c0 = arith.constant 0 : index
    %c0_0 = arith.constant 0 : index
    %0 = vector.load %arg2[%c0, %c0_0] : memref<16x128xf32, #tpu.memory_space<vmem>>, vector<16x128xf32>
    %c0_1 = arith.constant 0 : index
    %c0_2 = arith.constant 0 : index
    %1 = vector.load %arg3[%c0_1, %c0_2] : memref<128x128xf32, #tpu.memory_space<vmem>>, vector<128x128xf32>
    %cst = arith.constant dense<0.000000e+00> : vector<16x128xf32>
    %2 = tpu.matmul %0, %1, %cst {dimension_numbers = #tpu.dot_dimension_numbers<[1], [0], [0], [1], [0, 0, 1, 1], [], []>} : vector<16x128xf32>, vector<128x128xf32>, vector<16x128xf32> -> vector<16x128xf32>
    %c0_3 = arith.constant 0 : index
    %c0_4 = arith.constant 0 : index
    %3 = vector.load %arg4[%c0_3, %c0_4] : memref<16x128xf32, #tpu.memory_space<vmem>>, vector<16x128xf32>
    tpu.vector_store %arg4[%c0_3, %c0_4], %2 {strides = array<i32>} : memref<16x128xf32, #tpu.memory_space<vmem>>, vector<16x128xf32>,
    return
  }
  func.func @transform_0(%arg0: i32, %arg1: i32) -> (i32, i32) {
    %c0_i32 = arith.constant 0 : i32
    %c0_i32_0 = arith.constant 0 : i32
    return %arg0, %c0_i32 : i32, i32
  }
  func.func @transform_1(%arg0: i32, %arg1: i32) -> (i32, i32) {
    %c0_i32 = arith.constant 0 : i32
    %c0_i32_0 = arith.constant 0 : i32
    return %c0_i32, %arg1 : i32, i32
  }
  func.func @transform_2(%arg0: i32, %arg1: i32) -> (i32, i32) {
    %c0_i32 = arith.constant 0 : i32
    return %arg0, %arg1 : i32, i32
  }
}

</mosaic_0001>

<bundles_post_ra>
// kernel: tpu_custom_call.1
= control target key start
LH: loop header
LB: loop body
LE: loop exit
PB: predicated region body
PF: predicated region fallthrough
CT: control target
= control target key end

     0   :  { %7 = vsyncpa [#allocation3], 0  ;;  %s244_s0 = inlined_call_operand.hbm [shape: f32[16,128], index: 0, kind: input, shape index: {}]   ;;  %s245_s1 = inlined_call_operand.hbm [shape: f32[128,128], index: 1, kind: input, shape index: {}]   ;;  %s246_s2 = inlined_call_operand.hbm [shape: f32[16,128], index: 2, kind: output, shape index: {}]  }
   0x1   :  { %8 = vsyncpa [#allocation6], 0 }
   0x2   :  { %9 = vsyncpa [#allocation4], 0  ;;  %s14_s11 = sshll.u32 %s244_s0, 4  ;;  %s206_s12 = smov [#allocation2]   ;;  %s15_s11 = int_to_ptr.hbm [resolvable:$true] %s14_s11 }
   0x3   :  { %s16_s13 = sshll.u32 %s206_s12, 4  ;;  %s27_s16 = sshll.u32 %s245_s1, 4  ;;  %s17_s13 = int_to_ptr.vmem [resolvable:$true] %s16_s13  ;;  %s28_s16 = int_to_ptr.hbm [resolvable:$true] %s27_s16 }
   0x4   :  { %s207_s17 = smov 128   ;;  %s208_s18 = smov 8  }
   0x5   :  { %22 = dma.hbm_to_vmem [thread:$0]  %s15_s11, 256, %s17_s13, [#allocation3], %s207_s17, %s207_s17, %s208_s18  }
   0x6   :  { %s209_s19 = smov [#allocation5]  }
   0x7   :  { %s29_s20 = sshll.u32 %s209_s19, 4  ;;  %s30_s20 = int_to_ptr.vmem [resolvable:$true] %s29_s20 }
   0x8   :  { %35 = dma.hbm_to_vmem [thread:$0]  %s28_s16, 2048, %s30_s20, [#allocation6], %s207_s17, %s207_s17, %s208_s18  }
   0x9   :  { %200 = dma.done.wait [#allocation3], 256  }
   0xa   :  { %201 = vsyncadd [#allocation3], 4294967040 }
   0xb   :  { %202 = dma.done.wait [#allocation6], 2048  }
   0xc   :  { %203 = vsyncadd [#allocation6], 4294965248  ;;  %v61_v0 = vld [vmem:[#allocation5 + $0x78] sm:$0xff]  ;;  %v60_v1 = vld [vmem:[#allocation5 + $0x70] sm:$0xff]  ;;  %s210_s0 = smov [#allocation7]   ;;  %s93_s23 = sshll.u32 %s246_s2, 4  ;;  %s94_s23 = int_to_ptr.hbm [resolvable:$true] %s93_s23 }
   0xd   :  { %62 = vmatpush.msra.mxu0 %v61_v0  ;;  %107 = vmatpush.msra.mxu1 %v61_v0  ;;  %v59_v2 = vld [vmem:[#allocation5 + $0x68] sm:$0xff]  ;;  %v58_v3 = vld [vmem:[#allocation5 + $0x60] sm:$0xff]  ;;  %v57_v4 = vld [vmem:[#allocation5 + $0x58] sm:$0xff]  ;;  %s91_s1 = sshll.u32 %s210_s0, 4  ;;  %s92_s1 = int_to_ptr.vmem [resolvable:$true] %s91_s1 }
   0xe   :  { %v56_v5 = vld [vmem:[#allocation5 + $0x50] sm:$0xff]  ;;  %v55_v6 = vld [vmem:[#allocation5 + $0x48] sm:$0xff]  ;;  %v54_v7 = vld [vmem:[#allocation5 + $0x40] sm:$0xff] }
   0xf   :  { %63 = vmatpush.msra.mxu0 %v60_v1  ;;  %108 = vmatpush.msra.mxu1 %v60_v1  ;;  %v53_v8 = vld [vmem:[#allocation5 + $0x38] sm:$0xff]  ;;  %v52_v9 = vld [vmem:[#allocation5 + $0x30] sm:$0xff]  ;;  %v51_v10 = vld [vmem:[#allocation5 + $0x28] sm:$0xff] }
  0x10   :  { %v50_v11 = vld [vmem:[#allocation5 + $0x20] sm:$0xff]  ;;  %v49_v12 = vld [vmem:[#allocation5 + $0x18] sm:$0xff]  ;;  %v48_v13 = vld [vmem:[#allocation5 + $0x10] sm:$0xff] }
  0x11   :  { %64 = vmatpush.msra.mxu0 %v59_v2  ;;  %109 = vmatpush.msra.mxu1 %v59_v2  ;;  %v47_v14 = vld [vmem:[#allocation5 + $0x8] sm:$0xff]  ;;  %v46_v15 = vld [vmem:[#allocation5] sm:$0xff]  ;;  %v44_v16 = vld [vmem:[#allocation2] sm:$0xff] }
  0x12   :  { %v45_v17 = vld [vmem:[#allocation2 + $0x8] sm:$0xff] }
  0x13   :  { %65 = vmatpush.msra.mxu0 %v58_v3  ;;  %110 = vmatpush.msra.mxu1 %v58_v3 }
  0x15   :  { %66 = vmatpush.msra.mxu0 %v57_v4  ;;  %111 = vmatpush.msra.mxu1 %v57_v4 }
  0x17   :  { %67 = vmatpush.msra.mxu0 %v56_v5  ;;  %112 = vmatpush.msra.mxu1 %v56_v5 }
  0x19   :  { %68 = vmatpush.msra.mxu0 %v55_v6  ;;  %113 = vmatpush.msra.mxu1 %v55_v6 }
  0x1b   :  { %69 = vmatpush.msra.mxu0 %v54_v7  ;;  %114 = vmatpush.msra.mxu1 %v54_v7 }
  0x1d   :  { %70 = vmatpush.msra.mxu0 %v53_v8  ;;  %115 = vmatpush.msra.mxu1 %v53_v8 }
  0x1f   :  { %71 = vmatpush.msra.mxu0 %v52_v9  ;;  %116 = vmatpush.msra.mxu1 %v52_v9 }
  0x21   :  { %72 = vmatpush.msra.mxu0 %v51_v10  ;;  %117 = vmatpush.msra.mxu1 %v51_v10 }
  0x23   :  { %73 = vmatpush.msra.mxu0 %v50_v11  ;;  %118 = vmatpush.msra.mxu1 %v50_v11 }
  0x25   :  { %74 = vmatpush.msra.mxu0 %v49_v12  ;;  %119 = vmatpush.msra.mxu1 %v49_v12 }
  0x27   :  { %75 = vmatpush.msra.mxu0 %v48_v13  ;;  %120 = vmatpush.msra.mxu1 %v48_v13 }
  0x29   :  { %76 = vmatpush.msra.mxu0 %v47_v14  ;;  %121 = vmatpush.msra.mxu1 %v47_v14 }
  0x2b   :  { %77 = vmatpush.msra.mxu0 %v46_v15  ;;  %122 = vmatpush.msra.mxu1 %v46_v15 }
  0x2c   :  { %78 = vmatmul.f32.vlgmr.msra.gmra.mxu0 %v44_v16  ;;  %81 = vmatmul.f32.vlgmr.msra.gmra.mxu1 %v45_v17 }
  0xa9   :  { %v79_v18 = vpop.f32.mrf.mxu0  ;;  %v82_v19 = vpop.f32.mrf.mxu1 }
  0xaa   :  { %85 = vst [vmem:[#allocation7] sm:$0xff] %v79_v18 }
  0xab   :  { %86 = vst [vmem:[#allocation7 + $0x8] sm:$0xff] %v82_v19 }
  0xac   :  { %99 = dma.vmem_to_hbm [thread:$0]  %s92_s1, 256, %s94_s23, [#allocation4], %s207_s17, %s207_s17, %s208_s18  }
  0xad   :  { %204 = dma.done.wait [#allocation4], 256  }
  0xae   :  { %205 = vsyncadd [#allocation4], 4294967040 }
  0xaf   :  { %104 = vsyncpa [#allocation3], 1 }
  0xb0   :  { %105 = vsyncpa [#allocation6], 1 }
  0xb1   :  { %106 = vsyncpa [#allocation4], 1 }

</bundles_post_ra>
